<compile_context>
chip_gen: v5e
topology: v5e:2x2
jax: 0.10.0
libtpu: 0.0.40
codegen_flags: <defaults>
</compile_context>

<pallas_src>
import functools

import jax
import jax.numpy as jnp
from jax.experimental import pallas as pl
from jax.experimental.pallas import tpu as pltpu

LANE = 128                       # lane width (last dim alignment)
SUBLANE = 8                      # f32 sublane alignment (2nd-to-last dim)
_VMEM_LIMIT = 56 * 1024 * 1024   # < 64 MiB physical VMEM on v7x, ample on v5e/v6e
_FUSED_VMEM_BUDGET = 40 * 1024 * 1024  # budget for the fused (weights-resident) path


def _round_up(x, m):
    return (x + m - 1) // m * m


def _plan_m(m, max_tile=512):
    """Pick (padded_M, bm) from a /2 ladder, minimizing pad waste."""
    if m <= max_tile:
        bm = _round_up(m, SUBLANE)
        return bm, bm
    best = None
    t = max_tile
    while t >= LANE:
        mp = _round_up(m, t)
        waste = mp - m
        if best is None or waste < best[1]:
            best = (t, waste, mp)
        t //= 2
    bm, _, mp = best
    return mp, bm


def _largest_divisor_tile(dim, max_tile, min_tile=LANE):
    """Largest power-of-two tile <= max_tile that divides dim (dim % 128 == 0)."""
    t = max_tile
    while t > min_tile and dim % t != 0:
        t //= 2
    return t


# ----------------------------------------------------------------------------
# One-time parameter prep (hoisted out of the forward path).
# ----------------------------------------------------------------------------
def prepare_ffn_params(w1, b1, w2, b2, compute_dtype=None):
    """Transpose PyTorch [out,in] weights to [in,out], zero-pad d_model up to a
    lane multiple (128), and optionally cast to a narrower MXU dtype (bf16)."""
    d_model = w1.shape[1]
    assert w1.shape == (d_model, d_model) and w2.shape == (d_model, d_model)
    assert b1.shape == (d_model,) and b2.shape == (d_model,)

    dtype = jnp.dtype(compute_dtype) if compute_dtype is not None else w1.dtype
    d_pad = _round_up(d_model, LANE)
    pad = d_pad - d_model

    def prep_w(w):
        wt = w.T                                # [in, out]
        if pad:
            wt = jnp.pad(wt, ((0, pad), (0, pad)))
        return wt.astype(dtype)

    def prep_b(b):
        b2d = b.reshape(1, d_model)
        if pad:
            b2d = jnp.pad(b2d, ((0, 0), (0, pad)))
        return b2d.astype(jnp.float32)          # bias added in the f32 epilogue

    return dict(w1=prep_w(w1), b1=prep_b(b1), w2=prep_w(w2), b2=prep_b(b2),
                d_model=d_model, d_pad=d_pad, compute_dtype=dtype)


# ----------------------------------------------------------------------------
# Fused FFN kernel: both weights resident in VMEM, hidden tile never hits HBM.
# ----------------------------------------------------------------------------
def _ffn_fused_kernel(x_ref, w1_ref, b1_ref, w2_ref, b2_ref, o_ref):
    h = jnp.dot(x_ref[...], w1_ref[...], preferred_element_type=jnp.float32)
    h = jnp.maximum(h + b1_ref[...], 0.0)
    y = jnp.dot(h.astype(w2_ref.dtype), w2_ref[...],
                preferred_element_type=jnp.float32)
    o_ref[...] = (y + b2_ref[...]).astype(o_ref.dtype)


def _ffn_fused(x2, params, out_dtype, bm):
    mp, d_pad = x2.shape
    grid_m = mp // bm
    c_item = jnp.dtype(params["compute_dtype"]).itemsize
    cost = pl.CostEstimate(
        flops=4 * mp * d_pad * d_pad,
        transcendentals=0,
        bytes_accessed=(mp * d_pad * c_item
                        + mp * d_pad * jnp.dtype(out_dtype).itemsize
                        + 2 * d_pad * d_pad * c_item
                        + 2 * d_pad * 4),
    )
    return pl.pallas_call(
        _ffn_fused_kernel,
        out_shape=jax.ShapeDtypeStruct((mp, d_pad), out_dtype),
        grid_spec=pltpu.PrefetchScalarGridSpec(
            num_scalar_prefetch=0,
            grid=(grid_m,),
            in_specs=[
                pl.BlockSpec((bm, d_pad), lambda i: (i, 0)),      # x tile
                pl.BlockSpec((d_pad, d_pad), lambda i: (0, 0)),   # W1 (resident)
                pl.BlockSpec((1, d_pad), lambda i: (0, 0)),       # b1
                pl.BlockSpec((d_pad, d_pad), lambda i: (0, 0)),   # W2 (resident)
                pl.BlockSpec((1, d_pad), lambda i: (0, 0)),       # b2
            ],
            out_specs=pl.BlockSpec((bm, d_pad), lambda i: (i, 0)),
        ),
        compiler_params=pltpu.CompilerParams(
            dimension_semantics=("parallel",),
            vmem_limit_bytes=_VMEM_LIMIT,
        ),
        cost_estimate=cost,
    )(x2, params["w1"], params["b1"], params["w2"], params["b2"])


# ----------------------------------------------------------------------------
# Tiled linear fallback (large d_model): f32 accumulation, bias+ReLU epilogue.
# ----------------------------------------------------------------------------
def _linear_kernel_f32out(x_ref, w_ref, b_ref, o_ref, *, apply_relu):
    """f32 output: accumulate directly into the resident output block."""
    k = pl.program_id(2)
    part = jnp.dot(x_ref[...], w_ref[...], preferred_element_type=jnp.float32)

    @pl.when(k == 0)
    def _():
        o_ref[...] = part           # no separate zero-init pass

    @pl.when(k > 0)
    def _():
        o_ref[...] += part

    @pl.when(k == pl.num_programs(2) - 1)
    def _():
        y = o_ref[...] + b_ref[...]
        if apply_relu:
            y = jnp.maximum(y, 0.0)
        o_ref[...] = y


def _linear_kernel_acc(x_ref, w_ref, b_ref, o_ref, acc_ref, *, apply_relu):
    """Narrow output dtype: accumulate in an f32 VMEM scratch."""
    k = pl.program_id(2)
    part = jnp.dot(x_ref[...], w_ref[...], preferred_element_type=jnp.float32)

    @pl.when(k == 0)
    def _():
        acc_ref[...] = part

    @pl.when(k > 0)
    def _():
        acc_ref[...] += part

    @pl.when(k == pl.num_programs(2) - 1)
    def _():
        y = acc_ref[...] + b_ref[...]
        if apply_relu:
            y = jnp.maximum(y, 0.0)
        o_ref[...] = y.astype(o_ref.dtype)


def linear_pallas(x, w_t, b, *, apply_relu=False, out_dtype=None,
                  tm=512, tn=1024, tk=512):
    """y = (optionally relu)(x @ w_t + b).  w_t: [K,N] pre-transposed/pre-padded
    (K, N multiples of 128); b: [1,N] f32.  Only x may need per-call M padding."""
    m, k_dim = x.shape
    kw, n_dim = w_t.shape
    assert kw == k_dim and b.shape == (1, n_dim)
    assert k_dim % LANE == 0 and n_dim % LANE == 0
    out_dtype = jnp.dtype(out_dtype) if out_dtype is not None else x.dtype

    bk = _largest_divisor_tile(k_dim, tk)
    bn = _largest_divisor_tile(n_dim, tn)
    mp, bm = _plan_m(m, tm)
    xp = x if mp == m else jnp.pad(x, ((0, mp - m), (0, 0)))

    grid_m, grid_n, grid_k = mp // bm, n_dim // bn, k_dim // bk

    # Larger parallel axis first so a degenerate M axis doesn't idle a v7x core.
    if grid_m >= grid_n:
        grid = (grid_m, grid_n, grid_k)
        x_map = lambda i, j, k: (i, k)
        w_map = lambda i, j, k: (k, j)
        b_map = lambda i, j, k: (0, j)
        o_map = lambda i, j, k: (i, j)
    else:
        grid = (grid_n, grid_m, grid_k)
        x_map = lambda j, i, k: (i, k)
        w_map = lambda j, i, k: (k, j)
        b_map = lambda j, i, k: (0, j)
        o_map = lambda j, i, k: (i, j)

    f32_out = out_dtype == jnp.float32
    if f32_out:
        kernel = functools.partial(_linear_kernel_f32out, apply_relu=apply_relu)
        scratch = []
    else:
        kernel = functools.partial(_linear_kernel_acc, apply_relu=apply_relu)
        scratch = [pltpu.VMEM((bm, bn), jnp.float32)]

    in_item = jnp.dtype(x.dtype).itemsize
    cost = pl.CostEstimate(
        flops=2 * mp * k_dim * n_dim,
        transcendentals=0,
        bytes_accessed=(mp * k_dim * grid_n * in_item
                        + k_dim * n_dim * grid_m * jnp.dtype(w_t.dtype).itemsize
                        + n_dim * 4
                        + mp * n_dim * jnp.dtype(out_dtype).itemsize),
    )

    out = pl.pallas_call(
        kernel,
        out_shape=jax.ShapeDtypeStruct((mp, n_dim), out_dtype),
        grid_spec=pltpu.PrefetchScalarGridSpec(
            num_scalar_prefetch=0,
            grid=grid,
            in_specs=[
                pl.BlockSpec((bm, bk), x_map),
                pl.BlockSpec((bk, bn), w_map),
                pl.BlockSpec((1, bn), b_map),
            ],
            out_specs=pl.BlockSpec((bm, bn), o_map),
            scratch_shapes=scratch,
        ),
        compiler_params=pltpu.CompilerParams(
            dimension_semantics=("parallel", "parallel", "arbitrary"),
            vmem_limit_bytes=_VMEM_LIMIT,
        ),
        cost_estimate=cost,
    )(xp, w_t, b)

    if mp != m:
        out = out[:m]
    return out


# ----------------------------------------------------------------------------
# FeedForward.forward
# ----------------------------------------------------------------------------
def feed_forward(x, params, *, force_tiled=False):
    """l2(relu(l1(x))) with PyTorch nn.Linear semantics."""
    d_model = params["d_model"]
    d_pad = params["d_pad"]
    cdt = params["compute_dtype"]
    orig_shape = x.shape
    out_dtype = x.dtype
    assert orig_shape[-1] == d_model

    x2 = x.reshape(-1, d_model).astype(cdt)
    m = x2.shape[0]
    if d_pad != d_model:
        x2 = jnp.pad(x2, ((0, 0), (0, d_pad - d_model)))

    mp, bm = _plan_m(m)
    c_item = jnp.dtype(cdt).itemsize
    o_item = jnp.dtype(out_dtype).itemsize
    fused_bytes = (2 * d_pad * d_pad * c_item          # W1 + W2 resident
                   + 2 * d_pad * 4                     # biases
                   + 2 * bm * d_pad * (c_item + o_item)  # x / out double-buffered
                   + bm * d_pad * 4)                   # f32 hidden tile
    use_fused = (not force_tiled) and fused_bytes <= _FUSED_VMEM_BUDGET

    if use_fused:
        if mp != m:
            x2 = jnp.pad(x2, ((0, mp - m), (0, 0)))
        y = _ffn_fused(x2, params, out_dtype, bm)
        y = y[:m, :d_model]
    else:
        # Hidden stays in the compute dtype (halves HBM traffic for bf16).
        h = linear_pallas(x2, params["w1"], params["b1"],
                          apply_relu=True, out_dtype=cdt)
        y = linear_pallas(h, params["w2"], params["b2"],
                          apply_relu=False, out_dtype=out_dtype)
        y = y[:, :d_model]
    return y.reshape(orig_shape).astype(out_dtype)


if __name__ == "__main__":
    # Small shapes consistent with the module: batch=2, seq=8, d_model=32.
    B, S, d_model = 2, 8, 32

    key = jax.random.PRNGKey(0)
    kx, kw1, kb1, kw2, kb2 = jax.random.split(key, 5)

    x = jax.random.normal(kx, (B, S, d_model), dtype=jnp.float32)

    # nn.Linear init: uniform(-1/sqrt(fan_in), 1/sqrt(fan_in)), weight [out, in].
    bound = 1.0 / (d_model ** 0.5)
    w1 = jax.random.uniform(kw1, (d_model, d_model), jnp.float32, -bound, bound)
    b1 = jax.random.uniform(kb1, (d_model,), jnp.float32, -bound, bound)
    w2 = jax.random.uniform(kw2, (d_model, d_model), jnp.float32, -bound, bound)
    b2 = jax.random.uniform(kb2, (d_model,), jnp.float32, -bound, bound)

    # Reference (plain JAX, same math as the PyTorch module).
    ref = jnp.maximum(x @ w1.T + b1, 0.0) @ w2.T + b2

    # Exact-precision (f32) params -> fused single-kernel path.
    params_f32 = prepare_ffn_params(w1, b1, w2, b2)
    ffn_fused = jax.jit(functools.partial(feed_forward, params=params_f32))
    out_fused = jax.block_until_ready(ffn_fused(x))
    assert out_fused.shape == x.shape
    assert jnp.allclose(out_fused, ref, atol=1e-4, rtol=1e-4), "fused mismatch"

    # Tiled two-kernel fallback path (same math), exercised explicitly.
    ffn_tiled = jax.jit(functools.partial(feed_forward, params=params_f32,
                                          force_tiled=True))
    out_tiled = jax.block_until_ready(ffn_tiled(x))
    assert jnp.allclose(out_tiled, ref, atol=1e-4, rtol=1e-4), "tiled mismatch"

    # bf16 MXU-operand path (f32 accumulation) -- looser tolerance.
    params_bf16 = prepare_ffn_params(w1, b1, w2, b2, compute_dtype=jnp.bfloat16)
    ffn_bf16 = jax.jit(functools.partial(feed_forward, params=params_bf16))
    out_bf16 = jax.block_until_ready(ffn_bf16(x))
    assert jnp.allclose(out_bf16.astype(jnp.float32), ref,
                        atol=5e-2, rtol=5e-2), "bf16 mismatch"

    print("KERNEL_OK")
</pallas_src>

<mosaic_0001>
module attributes {stable_mosaic.version = 11 : i64} {
  func.func @_ffn_fused_kernel(%arg0: i32, %arg1: memref<16x128xf32, #tpu.memory_space<vmem>>, %arg2: memref<128x128xf32, #tpu.memory_space<vmem>>, %arg3: memref<1x128xf32, #tpu.memory_space<vmem>>, %arg4: memref<128x128xf32, #tpu.memory_space<vmem>>, %arg5: memref<1x128xf32, #tpu.memory_space<vmem>>, %arg6: memref<16x128xf32, #tpu.memory_space<vmem>>) attributes {dimension_semantics = [#tpu.dimension_semantics<parallel>], iteration_bounds = array<i64: 1>, scalar_prefetch = 0 : i64, scratch_operands = 0 : i64, tpu.core_type = #tpu.core_type<tc>, window_params = [{transform_indices = @transform_0, window_bounds = array<i64: 16, 128>}, {pipeline_mode = #tpu.pipeline_mode<synchronous>, transform_indices = @transform_1, window_bounds = array<i64: 128, 128>}, {pipeline_mode = #tpu.pipeline_mode<synchronous>, transform_indices = @transform_2, window_bounds = array<i64: 1, 128>}, {pipeline_mode = #tpu.pipeline_mode<synchronous>, transform_indices = @transform_3, window_bounds = array<i64: 128, 128>}, {pipeline_mode = #tpu.pipeline_mode<synchronous>, transform_indices = @transform_4, window_bounds = array<i64: 1, 128>}, {transform_indices = @transform_5, window_bounds = array<i64: 16, 128>}]} {
    %c0 = arith.constant 0 : index
    %c0_0 = arith.constant 0 : index
    %0 = vector.load %arg1[%c0, %c0_0] : memref<16x128xf32, #tpu.memory_space<vmem>>, vector<16x128xf32>
    %c0_1 = arith.constant 0 : index
    %c0_2 = arith.constant 0 : index
    %1 = vector.load %arg2[%c0_1, %c0_2] : memref<128x128xf32, #tpu.memory_space<vmem>>, vector<128x128xf32>
    %cst = arith.constant dense<0.000000e+00> : vector<16x128xf32>
    %2 = tpu.matmul %0, %1, %cst {dimension_numbers = #tpu.dot_dimension_numbers<[1], [0], [0], [1], [0, 0, 1, 1], [], []>} : vector<16x128xf32>, vector<128x128xf32>, vector<16x128xf32> -> vector<16x128xf32>
    %c0_3 = arith.constant 0 : index
    %c0_4 = arith.constant 0 : index
    %3 = vector.load %arg3[%c0_3, %c0_4] : memref<1x128xf32, #tpu.memory_space<vmem>>, vector<1x128xf32>
    %4 = vector.broadcast %3 : vector<1x128xf32> to vector<16x128xf32>
    %5 = arith.addf %2, %4 : vector<16x128xf32>
    %cst_5 = arith.constant 0.000000e+00 : f32
    %6 = vector.broadcast %cst_5 : f32 to vector<16x128xf32>
    %7 = arith.maximumf %5, %6 : vector<16x128xf32>
    %c0_6 = arith.constant 0 : index
    %c0_7 = arith.constant 0 : index
    %8 = vector.load %arg4[%c0_6, %c0_7] : memref<128x128xf32, #tpu.memory_space<vmem>>, vector<128x128xf32>
    %cst_8 = arith.constant dense<0.000000e+00> : vector<16x128xf32>
    %9 = tpu.matmul %7, %8, %cst_8 {dimension_numbers = #tpu.dot_dimension_numbers<[1], [0], [0], [1], [0, 0, 1, 1], [], []>} : vector<16x128xf32>, vector<128x128xf32>, vector<16x128xf32> -> vector<16x128xf32>
    %c0_9 = arith.constant 0 : index
    %c0_10 = arith.constant 0 : index
    %10 = vector.load %arg5[%c0_9, %c0_10] : memref<1x128xf32, #tpu.memory_space<vmem>>, vector<1x128xf32>
    %11 = vector.broadcast %10 : vector<1x128xf32> to vector<16x128xf32>
    %12 = arith.addf %9, %11 : vector<16x128xf32>
    %c0_11 = arith.constant 0 : index
    %c0_12 = arith.constant 0 : index
    %13 = vector.load %arg6[%c0_11, %c0_12] : memref<16x128xf32, #tpu.memory_space<vmem>>, vector<16x128xf32>
    tpu.vector_store %arg6[%c0_11, %c0_12], %12 {strides = array<i32>} : memref<16x128xf32, #tpu.memory_space<vmem>>, vector<16x128xf32>,
    return
  }
  func.func @transform_0(%arg0: i32) -> (i32, i32) {
    %c0_i32 = arith.constant 0 : i32
    %c0_i32_0 = arith.constant 0 : i32
    return %arg0, %c0_i32 : i32, i32
  }
  func.func @transform_1(%arg0: i32) -> (i32, i32) {
    %c0_i32 = arith.constant 0 : i32
    %c0_i32_0 = arith.constant 0 : i32
    %c0_i32_1 = arith.constant 0 : i32
    return %c0_i32, %c0_i32_0 : i32, i32
  }
  func.func @transform_2(%arg0: i32) -> (i32, i32) {
    %c0_i32 = arith.constant 0 : i32
    %c0_i32_0 = arith.constant 0 : i32
    %c0_i32_1 = arith.constant 0 : i32
    return %c0_i32, %c0_i32_0 : i32, i32
  }
  func.func @transform_3(%arg0: i32) -> (i32, i32) {
    %c0_i32 = arith.constant 0 : i32
    %c0_i32_0 = arith.constant 0 : i32
    %c0_i32_1 = arith.constant 0 : i32
    return %c0_i32, %c0_i32_0 : i32, i32
  }
  func.func @transform_4(%arg0: i32) -> (i32, i32) {
    %c0_i32 = arith.constant 0 : i32
    %c0_i32_0 = arith.constant 0 : i32
    %c0_i32_1 = arith.constant 0 : i32
    return %c0_i32, %c0_i32_0 : i32, i32
  }
  func.func @transform_5(%arg0: i32) -> (i32, i32) {
    %c0_i32 = arith.constant 0 : i32
    %c0_i32_0 = arith.constant 0 : i32
    return %arg0, %c0_i32 : i32, i32
  }
}

</mosaic_0001>

<bundles_post_ra>
// kernel: feed_forward.1
= control target key start
LH: loop header
LB: loop body
LE: loop exit
PB: predicated region body
PF: predicated region fallthrough
CT: control target
= control target key end

     0   :  { %10 = vsyncpa [#allocation3], 0  ;;  %s298_s0 = inlined_call_operand.vmem [shape: f32[16,128], index: 0, kind: input, shape index: {}]   ;;  %s299_s1 = inlined_call_operand.hbm [shape: f32[128,128], index: 1, kind: input, shape index: {}]   ;;  %s300_s2 = inlined_call_operand.vmem [shape: f32[1,128], index: 2, kind: input, shape index: {}]   ;;  %s301_s3 = inlined_call_operand.hbm [shape: f32[128,128], index: 3, kind: input, shape index: {}]   ;;  %s302_s4 = inlined_call_operand.vmem [shape: f32[1,128], index: 4, kind: input, shape index: {}]   ;;  %s303_s5 = inlined_call_operand.vmem [shape: f32[16,128], index: 5, kind: output, shape index: {}]  }
   0x1   :  { %s18_s20 = sshll.u32 %s299_s1, 4  ;;  %s19_s20 = int_to_ptr.hbm [resolvable:$true] %s18_s20 }
   0x2   :  { %11 = vsyncpa [#allocation5], 0  ;;  %s240_s21 = smov [#allocation2]   ;;  %s33_s25 = sshll.u32 %s301_s3, 4  ;;  %s34_s25 = int_to_ptr.hbm [resolvable:$true] %s33_s25 }
   0x3   :  { %s20_s22 = sshll.u32 %s240_s21, 4  ;;  %s241_s26 = smov 128   ;;  %s21_s22 = int_to_ptr.vmem [resolvable:$true] %s20_s22 }
   0x4   :  { %s242_s27 = smov 8   ;;  %s243_s28 = smov [#allocation4]  }
   0x5   :  { %26 = dma.hbm_to_vmem [thread:$0]  %s19_s20, 2048, %s21_s22, [#allocation3], %s241_s26, %s241_s26, %s242_s27  }
   0x6   :  { %s35_s29 = sshll.u32 %s243_s28, 4  ;;  %s36_s29 = int_to_ptr.vmem [resolvable:$true] %s35_s29 }
   0x7   :  { %41 = dma.hbm_to_vmem [thread:$0]  %s34_s25, 2048, %s36_s29, [#allocation5], %s241_s26, %s241_s26, %s242_s27  }
   0x8   :  { %236 = dma.done.wait [#allocation3], 2048  }
   0x9   :  { %237 = vsyncadd [#allocation3], 4294965248 }
   0xa   :  { %238 = dma.done.wait [#allocation5], 2048  }
   0xb   :  { %239 = vsyncadd [#allocation5], 4294965248  ;;  %v69_v0 = vld [vmem:[#allocation2 + $0x78] sm:$0xff]  ;;  %v68_v1 = vld [vmem:[#allocation2 + $0x70] sm:$0xff] }
   0xc   :  { %150 = vmatpush.msra.mxu2 %v69_v0  ;;  %74 = vmatpush.msra.mxu0 %v69_v0  ;;  %v67_v2 = vld [vmem:[#allocation2 + $0x68] sm:$0xff]  ;;  %v66_v3 = vld [vmem:[#allocation2 + $0x60] sm:$0xff]  ;;  %v65_v4 = vld [vmem:[#allocation2 + $0x58] sm:$0xff] }
   0xd   :  { %v114_v5 = vld [vmem:[#allocation4 + $0x78] sm:$0xff]  ;;  %v113_v6 = vld [vmem:[#allocation4 + $0x70] sm:$0xff]  ;;  %v112_v8 = vld [vmem:[#allocation4 + $0x68] sm:$0xff] }
   0xe   :  { %151 = vmatpush.msra.mxu2 %v68_v1  ;;  %75 = vmatpush.msra.mxu0 %v68_v1  ;;  %v64_v7 = vld [vmem:[#allocation2 + $0x50] sm:$0xff]  ;;  %v63_v9 = vld [vmem:[#allocation2 + $0x48] sm:$0xff]  ;;  %v111_v10 = vld [vmem:[#allocation4 + $0x60] sm:$0xff] }
   0xf   :  { %166 = vmatpush.msra.mxu3 %v114_v5  ;;  %119 = vmatpush.msra.mxu1 %v114_v5  ;;  %v62_v11 = vld [vmem:[#allocation2 + $0x40] sm:$0xff]  ;;  %v110_v12 = vld [vmem:[#allocation4 + $0x58] sm:$0xff]  ;;  %v109_v14 = vld [vmem:[#allocation4 + $0x50] sm:$0xff] }
  0x10   :  { %152 = vmatpush.msra.mxu2 %v67_v2  ;;  %76 = vmatpush.msra.mxu0 %v67_v2  ;;  %v61_v13 = vld [vmem:[#allocation2 + $0x38] sm:$0xff]  ;;  %v60_v15 = vld [vmem:[#allocation2 + $0x30] sm:$0xff]  ;;  %v108_v16 = vld [vmem:[#allocation4 + $0x48] sm:$0xff] }
  0x11   :  { %167 = vmatpush.msra.mxu3 %v113_v6  ;;  %120 = vmatpush.msra.mxu1 %v113_v6  ;;  %v59_v17 = vld [vmem:[#allocation2 + $0x28] sm:$0xff]  ;;  %v107_v18 = vld [vmem:[#allocation4 + $0x40] sm:$0xff]  ;;  %v106_v20 = vld [vmem:[#allocation4 + $0x38] sm:$0xff] }
  0x12   :  { %153 = vmatpush.msra.mxu2 %v66_v3  ;;  %77 = vmatpush.msra.mxu0 %v66_v3  ;;  %v58_v19 = vld [vmem:[#allocation2 + $0x20] sm:$0xff]  ;;  %v57_v21 = vld [vmem:[#allocation2 + $0x18] sm:$0xff]  ;;  %v105_v22 = vld [vmem:[#allocation4 + $0x30] sm:$0xff] }
  0x13   :  { %168 = vmatpush.msra.mxu3 %v112_v8  ;;  %121 = vmatpush.msra.mxu1 %v112_v8  ;;  %v56_v23 = vld [vmem:[#allocation2 + $0x10] sm:$0xff]  ;;  %v104_v24 = vld [vmem:[#allocation4 + $0x28] sm:$0xff]  ;;  %v103_v26 = vld [vmem:[#allocation4 + $0x20] sm:$0xff] }
  0x14   :  { %154 = vmatpush.msra.mxu2 %v65_v4  ;;  %78 = vmatpush.msra.mxu0 %v65_v4  ;;  %v55_v25 = vld [vmem:[#allocation2 + $0x8] sm:$0xff]  ;;  %v54_v27 = vld [vmem:[#allocation2] sm:$0xff]  ;;  %v102_v30 = vld [vmem:[#allocation4 + $0x18] sm:$0xff] }
  0x15   :  { %169 = vmatpush.msra.mxu3 %v111_v10  ;;  %122 = vmatpush.msra.mxu1 %v111_v10  ;;  %v53_v28 = vld [vmem:[%s298_s0 + $0x8] sm:$0xff]  ;;  %v52_v29 = vld [vmem:[%s298_s0] sm:$0xff]  ;;  %v101_v31 = vld [vmem:[#allocation4 + $0x10] sm:$0xff] }
  0x16   :  { %155 = vmatpush.msra.mxu2 %v64_v7  ;;  %79 = vmatpush.msra.mxu0 %v64_v7  ;;  %v100_v32 = vld [vmem:[#allocation4 + $0x8] sm:$0xff]  ;;  %v99_v33 = vld [vmem:[#allocation4] sm:$0xff] }
  0x17   :  { %170 = vmatpush.msra.mxu3 %v110_v12  ;;  %123 = vmatpush.msra.mxu1 %v110_v12  ;;  %v186_v34 = vld [vmem:[%s300_s2] ss:$0 sm:$0xff] }
  0x18   :  { %156 = vmatpush.msra.mxu2 %v63_v9  ;;  %80 = vmatpush.msra.mxu0 %v63_v9  ;;  %v187_v41 = vld [vmem:[%s302_s4] ss:$0 sm:$0xff] }
  0x19   :  { %171 = vmatpush.msra.mxu3 %v109_v14  ;;  %124 = vmatpush.msra.mxu1 %v109_v14 }
  0x1a   :  { %157 = vmatpush.msra.mxu2 %v62_v11  ;;  %81 = vmatpush.msra.mxu0 %v62_v11 }
  0x1b   :  { %172 = vmatpush.msra.mxu3 %v108_v16  ;;  %125 = vmatpush.msra.mxu1 %v108_v16 }
  0x1c   :  { %158 = vmatpush.msra.mxu2 %v61_v13  ;;  %82 = vmatpush.msra.mxu0 %v61_v13 }
  0x1d   :  { %173 = vmatpush.msra.mxu3 %v107_v18  ;;  %126 = vmatpush.msra.mxu1 %v107_v18 }
  0x1e   :  { %159 = vmatpush.msra.mxu2 %v60_v15  ;;  %83 = vmatpush.msra.mxu0 %v60_v15 }
  0x1f   :  { %174 = vmatpush.msra.mxu3 %v106_v20  ;;  %127 = vmatpush.msra.mxu1 %v106_v20 }
  0x20   :  { %160 = vmatpush.msra.mxu2 %v59_v17  ;;  %84 = vmatpush.msra.mxu0 %v59_v17 }
  0x21   :  { %175 = vmatpush.msra.mxu3 %v105_v22  ;;  %128 = vmatpush.msra.mxu1 %v105_v22 }
  0x22   :  { %161 = vmatpush.msra.mxu2 %v58_v19  ;;  %85 = vmatpush.msra.mxu0 %v58_v19 }
  0x23   :  { %176 = vmatpush.msra.mxu3 %v104_v24  ;;  %129 = vmatpush.msra.mxu1 %v104_v24 }
  0x24   :  { %162 = vmatpush.msra.mxu2 %v57_v21  ;;  %86 = vmatpush.msra.mxu0 %v57_v21 }
  0x25   :  { %177 = vmatpush.msra.mxu3 %v103_v26  ;;  %130 = vmatpush.msra.mxu1 %v103_v26 }
  0x26   :  { %163 = vmatpush.msra.mxu2 %v56_v23  ;;  %87 = vmatpush.msra.mxu0 %v56_v23 }
  0x27   :  { %178 = vmatpush.msra.mxu3 %v102_v30  ;;  %131 = vmatpush.msra.mxu1 %v102_v30 }
  0x28   :  { %164 = vmatpush.msra.mxu2 %v55_v25  ;;  %88 = vmatpush.msra.mxu0 %v55_v25 }
  0x29   :  { %179 = vmatpush.msra.mxu3 %v101_v31  ;;  %132 = vmatpush.msra.mxu1 %v101_v31 }
  0x2a   :  { %165 = vmatpush.msra.mxu2 %v54_v27  ;;  %89 = vmatpush.msra.mxu0 %v54_v27 }
  0x2b   :  { %93 = vmatmul.f32.vlgmr.msra.gmra.mxu2 %v53_v28  ;;  %90 = vmatmul.f32.vlgmr.msra.gmra.mxu0 %v52_v29 }
  0x2c   :  { %180 = vmatpush.msra.mxu3 %v100_v32  ;;  %133 = vmatpush.msra.mxu1 %v100_v32 }
  0x2e   :  { %181 = vmatpush.msra.mxu3 %v99_v33  ;;  %134 = vmatpush.msra.mxu1 %v99_v33 }
  0xa8   :  { %v91_v35 = vpop.f32.mrf.mxu0 }
  0xa9   :  { %v92_v36 = vadd.f32 %v186_v34, %v91_v35 }
  0xab   :  { %v97_v37 = vmax.f32 %v92_v36, 0.0 }
  0xad   :  { %135 = vmatmul.f32.vlgmr.msra.gmra.mxu1 %v97_v37 }
  0xae   :  { %v94_v38 = vpop.f32.mrf.mxu2 }
  0xaf   :  { %v95_v39 = vadd.f32 %v186_v34, %v94_v38 }
  0xb1   :  { %v98_v40 = vmax.f32 %v95_v39, 0.0 }
  0xb3   :  { %138 = vmatmul.f32.vlgmr.msra.gmra.mxu3 %v98_v40 }
 0x12a   :  { %v136_v42 = vpop.f32.mrf.mxu1 }
 0x12b   :  { %v137_v43 = vadd.f32 %v187_v41, %v136_v42 }
 0x12d   :  { %142 = vst [vmem:[%s303_s5] sm:$0xff] %v137_v43 }
 0x136   :  { %v139_v44 = vpop.f32.mrf.mxu3 }
 0x137   :  { %v140_v45 = vadd.f32 %v187_v41, %v139_v44 }
 0x139   :  { %143 = vst [vmem:[%s303_s5 + $0x8] sm:$0xff] %v140_v45 }
 0x13a   :  { %148 = vsyncpa [#allocation3], 1 }
 0x13b   :  { %149 = vsyncpa [#allocation5], 1 }

</bundles_post_ra>
